<compile_context>
chip_gen: v7x
topology: tpu7x:2x2x1
jax: 0.10.0
libtpu: 0.0.40
codegen_flags: <defaults>
</compile_context>

<pallas_src>
import functools

import jax
import jax.numpy as jnp
from jax import lax
from jax.experimental import pallas as pl
from jax.experimental.pallas import tpu as pltpu

_LANE = 128


def _round_up(x, m):
    return ((x + m - 1) // m) * m


def _vmem_caps():
    """Return (per-step tile budget, vmem_limit_bytes), derived from chip VMEM."""
    cap = 64 * 1024 * 1024                      # conservative default (v7x-sized)
    try:
        info = pltpu.get_tpu_info()
        cap = int(getattr(info, "vmem_capacity_bytes", cap))
    except Exception:
        pass
    tile_budget = min(12 * 1024 * 1024, cap // 8)      # per-step bytes (x+w+out)
    vmem_limit = min(cap * 3 // 4, 96 * 1024 * 1024)   # headroom on 64 MiB parts
    return tile_budget, vmem_limit


def _choose_tiles(K, b_pad, cin_pad, cout_pad, in_itemsize, tile_budget):
    """Pick (kt, nt): K tile (matmul batch axis) and Cout tile (lane / MXU-N)."""
    nt = 256 if cout_pad % 256 == 0 else 128
    per_mode = (2 * cin_pad * nt) * in_itemsize        # wr + wi tiles
    per_mode += (b_pad * 2 * cin_pad) * in_itemsize    # stacked [xr|xi] tile
    per_mode += (2 * b_pad * nt) * 4                   # f32 real/imag outputs
    kt_max = int(max(1, min(tile_budget // per_mode, K)))
    # Divisor-style tiling: pad the mode axis by < n_kt instead of < kt_max.
    n_kt = pl.cdiv(K, kt_max)
    # Make sure a 2-TensorCore part (v7x) has several grid steps to shard.
    outer_steps = 2 * (cout_pad // nt)
    if outer_steps * n_kt < 8:
        n_kt = max(min(K, pl.cdiv(8, outer_steps)), n_kt)
    kt = pl.cdiv(K, n_kt)
    return kt, nt


def _spectral_mul_kernel(x2_ref, wr_ref, wi_ref, or_ref, oi_ref):
    """Complex channel mix for one (segment, K-tile, Cout-tile) block.

    x2 : (KT, B, 2*Cin)  = [xr | xi] stacked on the contraction axis
    wr : (KT, Cin, NT)   wi : (KT, Cin, NT)
    or/oi : (KT, B, NT) f32
       real = xr@wr - xi@wi    imag = xr@wi + xi@wr
    realized as 2 batched MXU matmuls against in-VMEM weight stacks
    [wr; -wi] and [wi; wr] (stacked-complex form, no Gauss cancellation).
    """
    x2 = x2_ref[...]
    wr = wr_ref[...]
    wi = wi_ref[...]

    # Sublane-aligned concat (Cin is padded to a sublane multiple): the stacked
    # weights only ever exist in VMEM/vregs, no extra HBM traffic.
    w_re = jnp.concatenate([wr, -wi], axis=1)      # (KT, 2*Cin, NT)
    w_im = jnp.concatenate([wi, wr], axis=1)

    dn = (((2,), (1,)), ((0,), (0,)))              # contract 2*Cin, batch over modes
    # bf16 operands are MXU-native (single pass); only the f32 reference path
    # pays for full-precision emulation.
    prec = lax.Precision.HIGHEST if x2.dtype == jnp.float32 else None

    def bmm(a, b):
        return lax.dot_general(a, b, dn, precision=prec,
                               preferred_element_type=jnp.float32)

    or_ref[...] = bmm(x2, w_re)
    oi_ref[...] = bmm(x2, w_im)


def _spectral_channel_mix(x2, wr, wi, kt, nt, vmem_limit):
    """x2: (2,Kp,Bp,2*Cip); wr/wi: (2,Kp,Cip,Cop) -> two (2,Kp,Bp,Cop) f32 arrays."""
    _, Kp, Bp, Ci2 = x2.shape
    Cip, Cop = wr.shape[2], wr.shape[3]
    # Cout tile innermost: the x block index is independent of it, so Pallas
    # does not re-fetch x while sweeping Cout tiles.
    grid = (2, Kp // kt, Cop // nt)

    x_spec = pl.BlockSpec((pl.Squeezed(), kt, Bp, Ci2), lambda s, k, n: (s, k, 0, 0))
    w_spec = pl.BlockSpec((pl.Squeezed(), kt, Cip, nt), lambda s, k, n: (s, k, 0, n))
    o_spec = pl.BlockSpec((pl.Squeezed(), kt, Bp, nt), lambda s, k, n: (s, k, 0, n))

    in_bytes = x2.dtype.itemsize
    flops = 2 * (2 * Kp * Bp * Ci2 * Cop) * 2          # 2 batched matmuls, 2 flop/MAC
    bytes_accessed = (in_bytes * 2 * Kp * Bp * Ci2
                      + in_bytes * 2 * 2 * Kp * Cip * Cop
                      + 4 * 2 * 2 * Kp * Bp * Cop)

    return pl.pallas_call(
        _spectral_mul_kernel,
        out_shape=(
            jax.ShapeDtypeStruct((2, Kp, Bp, Cop), jnp.float32),
            jax.ShapeDtypeStruct((2, Kp, Bp, Cop), jnp.float32),
        ),
        grid_spec=pltpu.PrefetchScalarGridSpec(
            num_scalar_prefetch=0,
            grid=grid,
            in_specs=[x_spec, w_spec, w_spec],
            out_specs=[o_spec, o_spec],
        ),
        compiler_params=pltpu.CompilerParams(
            dimension_semantics=("parallel", "parallel", "parallel"),
            vmem_limit_bytes=int(vmem_limit),
        ),
        cost_estimate=pl.CostEstimate(
            flops=int(flops), transcendentals=0,
            bytes_accessed=int(bytes_accessed)),
    )(x2, wr, wi)


def spectral_conv2d(x, weights1, weights2, modes1, modes2,
                    compute_dtype=jnp.bfloat16):
    """Forward pass of SpectralConv2d (NCHW).

    x        : (B, Cin, H, W) float32
    weights1 : (Cin, Cout, modes1, modes2) complex64   (low-frequency rows)
    weights2 : (Cin, Cout, modes1, modes2) complex64   (high-frequency rows)
    compute_dtype : dtype streamed into the MXU (bf16 default; f32 accumulate).
    returns  : (B, Cout, H, W) float32
    """
    B, Cin, H, W = x.shape
    Cout = weights1.shape[1]
    m1, m2 = modes1, modes2
    K = m1 * m2

    compute_dtype = jnp.dtype(compute_dtype)
    sub = 16 if compute_dtype.itemsize == 2 else 8     # sublane packing per dtype

    b_pad = _round_up(B, sub)
    cin_pad = _round_up(Cin, sub)
    cout_pad = _round_up(Cout, _LANE)
    tile_budget, vmem_limit = _vmem_caps()
    kt, nt = _choose_tiles(K, b_pad, cin_pad, cout_pad,
                           compute_dtype.itemsize, tile_budget)
    k_pad = _round_up(K, kt)

    # --- FFT + retained-mode gather (plain JAX glue; no Pallas FFT primitive) ---
    x_ft = jnp.fft.rfft2(x)                                    # (B, Cin, H, W//2+1)
    low = x_ft[:, :, :m1, :m2]
    high = x_ft[:, :, H - m1:, :m2]
    x_blk = jnp.stack([low, high], axis=0)                     # (2, B, Cin, m1, m2)
    x_blk = jnp.transpose(x_blk, (0, 3, 4, 1, 2)).reshape(2, K, B, Cin)
    # TODO(synk): gather the low/high row blocks straight out of x_ft via the
    # BlockSpec index_map (scalar-prefetched row offsets) once the complex rfft
    # output can be viewed by Pallas refs; for now the gather stays host-side.

    pad_x = ((0, 0), (0, k_pad - K), (0, b_pad - B), (0, cin_pad - Cin))
    x2 = jnp.concatenate(
        [jnp.pad(jnp.real(x_blk), pad_x), jnp.pad(jnp.imag(x_blk), pad_x)],
        axis=-1).astype(compute_dtype)                         # (2, Kp, Bp, 2*Cip)

    # --- weight packing into the kernel layout (2, Kp, Cip, Cop), split r/i ---
    # TODO(synk): store the FNO weights pre-packed in this layout (and dtype) as
    # model parameters so this per-call transpose/pad disappears from the forward.
    w_blk = jnp.stack([weights1, weights2], axis=0)            # (2, Cin, Cout, m1, m2)
    w_blk = jnp.transpose(w_blk, (0, 3, 4, 1, 2)).reshape(2, K, Cin, Cout)
    pad_w = ((0, 0), (0, k_pad - K), (0, cin_pad - Cin), (0, cout_pad - Cout))
    wr = jnp.pad(jnp.real(w_blk), pad_w).astype(compute_dtype)
    wi = jnp.pad(jnp.imag(w_blk), pad_w).astype(compute_dtype)

    out_r, out_i = _spectral_channel_mix(x2, wr, wi, kt, nt, vmem_limit)

    # --- un-pad, rebuild complex modes, scatter, inverse FFT (JAX glue) ---
    out_c = (out_r[:, :K, :B, :Cout]
             + 1j * out_i[:, :K, :B, :Cout]).astype(jnp.complex64)
    out_c = out_c.reshape(2, m1, m2, B, Cout).transpose(0, 3, 4, 1, 2)

    out_ft = jnp.zeros((B, Cout, H, W // 2 + 1), dtype=jnp.complex64)
    out_ft = out_ft.at[:, :, :m1, :m2].set(out_c[0])
    out_ft = out_ft.at[:, :, H - m1:, :m2].set(out_c[1])
    return jnp.fft.irfft2(out_ft, s=(H, W)).astype(jnp.float32)


def _reference(x, weights1, weights2, modes1, modes2):
    """Pure-JAX reference mirroring the PyTorch forward."""
    B, Cin, H, W = x.shape
    Cout = weights1.shape[1]
    x_ft = jnp.fft.rfft2(x)
    out_ft = jnp.zeros((B, Cout, H, W // 2 + 1), dtype=jnp.complex64)
    out_ft = out_ft.at[:, :, :modes1, :modes2].set(
        jnp.einsum("bixy,ioxy->boxy", x_ft[:, :, :modes1, :modes2], weights1))
    out_ft = out_ft.at[:, :, H - modes1:, :modes2].set(
        jnp.einsum("bixy,ioxy->boxy", x_ft[:, :, H - modes1:, :modes2], weights2))
    return jnp.fft.irfft2(out_ft, s=(H, W)).astype(jnp.float32)


if __name__ == "__main__":
    # Small, deterministic problem.
    B, Cin, Cout = 2, 4, 4
    H = W = 16
    modes1 = modes2 = 4

    key = jax.random.PRNGKey(0)
    kx, kw1r, kw1i, kw2r, kw2i = jax.random.split(key, 5)

    x = jax.random.normal(kx, (B, Cin, H, W), dtype=jnp.float32)

    # Deterministic init matching torch: scale * rand(...) with complex uniform [0,1).
    scale = 1.0 / (Cin * Cout)
    weights1 = scale * (
        jax.random.uniform(kw1r, (Cin, Cout, modes1, modes2), dtype=jnp.float32)
        + 1j * jax.random.uniform(kw1i, (Cin, Cout, modes1, modes2), dtype=jnp.float32)
    ).astype(jnp.complex64)
    weights2 = scale * (
        jax.random.uniform(kw2r, (Cin, Cout, modes1, modes2), dtype=jnp.float32)
        + 1j * jax.random.uniform(kw2i, (Cin, Cout, modes1, modes2), dtype=jnp.float32)
    ).astype(jnp.complex64)

    ref = jax.block_until_ready(_reference(x, weights1, weights2, modes1, modes2))

    # Default perf path: bf16 weight/activation streaming, f32 MXU accumulate.
    fwd_bf16 = jax.jit(functools.partial(
        spectral_conv2d, modes1=modes1, modes2=modes2, compute_dtype=jnp.bfloat16))
    out_bf16 = jax.block_until_ready(fwd_bf16(x, weights1, weights2))
    assert out_bf16.shape == (B, Cout, H, W)
    assert jnp.allclose(out_bf16, ref, atol=3e-3, rtol=3e-2), "bf16 path mismatch"

    # Exactness check of the kernel math: f32 streaming (HIGHEST-precision MXU).
    fwd_f32 = jax.jit(functools.partial(
        spectral_conv2d, modes1=modes1, modes2=modes2, compute_dtype=jnp.float32))
    out_f32 = jax.block_until_ready(fwd_f32(x, weights1, weights2))
    assert jnp.allclose(out_f32, ref, atol=1e-5, rtol=1e-5), "f32 path mismatch"

    print("KERNEL_OK")
</pallas_src>

<mosaic_0001>
module attributes {stable_mosaic.version = 11 : i64} {
  func.func @_spectral_mul_kernel(%arg0: i32, %arg1: i32, %arg2: i32, %arg3: memref<1x4x16x32xbf16, #tpu.memory_space<vmem>>, %arg4: memref<1x4x16x128xbf16, #tpu.memory_space<vmem>>, %arg5: memref<1x4x16x128xbf16, #tpu.memory_space<vmem>>, %arg6: memref<1x4x16x128xf32, #tpu.memory_space<vmem>>, %arg7: memref<1x4x16x128xf32, #tpu.memory_space<vmem>>) attributes {dimension_semantics = [#tpu.dimension_semantics<parallel>, #tpu.dimension_semantics<parallel>, #tpu.dimension_semantics<parallel>], iteration_bounds = array<i64: 2, 4, 1>, scalar_prefetch = 0 : i64, scratch_operands = 0 : i64, tpu.core_type = #tpu.core_type<tc>, window_params = [{transform_indices = @transform_0, window_bounds = array<i64: 1, 4, 16, 32>}, {transform_indices = @transform_1, window_bounds = array<i64: 1, 4, 16, 128>}, {transform_indices = @transform_2, window_bounds = array<i64: 1, 4, 16, 128>}, {transform_indices = @transform_3, window_bounds = array<i64: 1, 4, 16, 128>}, {transform_indices = @transform_4, window_bounds = array<i64: 1, 4, 16, 128>}]} {
    %c0 = arith.constant 0 : index
    %c0_0 = arith.constant 0 : index
    %c0_1 = arith.constant 0 : index
    %c0_2 = arith.constant 0 : index
    %0 = vector.load %arg3[%c0, %c0_0, %c0_1, %c0_2] : memref<1x4x16x32xbf16, #tpu.memory_space<vmem>>, vector<1x4x16x32xbf16>
    %1 = vector.shape_cast %0 : vector<1x4x16x32xbf16> to vector<4x16x32xbf16>
    %c0_3 = arith.constant 0 : index
    %c0_4 = arith.constant 0 : index
    %c0_5 = arith.constant 0 : index
    %c0_6 = arith.constant 0 : index
    %2 = vector.load %arg4[%c0_3, %c0_4, %c0_5, %c0_6] : memref<1x4x16x128xbf16, #tpu.memory_space<vmem>>, vector<1x4x16x128xbf16>
    %3 = vector.shape_cast %2 : vector<1x4x16x128xbf16> to vector<4x16x128xbf16>
    %c0_7 = arith.constant 0 : index
    %c0_8 = arith.constant 0 : index
    %c0_9 = arith.constant 0 : index
    %c0_10 = arith.constant 0 : index
    %4 = vector.load %arg5[%c0_7, %c0_8, %c0_9, %c0_10] : memref<1x4x16x128xbf16, #tpu.memory_space<vmem>>, vector<1x4x16x128xbf16>
    %5 = vector.shape_cast %4 : vector<1x4x16x128xbf16> to vector<4x16x128xbf16>
    %cst = arith.constant 0.000000e+00 : bf16
    %6 = vector.broadcast %cst : bf16 to vector<4x16x128xbf16>
    %7 = arith.subf %6, %5 : vector<4x16x128xbf16>
    %8 = tpu.concatenate %3, %7 in 1 : vector<4x16x128xbf16>, vector<4x16x128xbf16> -> vector<4x32x128xbf16>
    %9 = tpu.concatenate %5, %3 in 1 : vector<4x16x128xbf16>, vector<4x16x128xbf16> -> vector<4x32x128xbf16>
    %cst_11 = arith.constant dense<0.000000e+00> : vector<4x16x128xf32>
    %10 = tpu.matmul %1, %8, %cst_11 {dimension_numbers = #tpu.dot_dimension_numbers<[2], [1], [1], [2], [0, 0, 0, 1, 1, 2], [0], [0]>} : vector<4x16x32xbf16>, vector<4x32x128xbf16>, vector<4x16x128xf32> -> vector<4x16x128xf32>
    %c0_12 = arith.constant 0 : index
    %c0_13 = arith.constant 0 : index
    %c0_14 = arith.constant 0 : index
    %c0_15 = arith.constant 0 : index
    %11 = vector.load %arg6[%c0_12, %c0_13, %c0_14, %c0_15] : memref<1x4x16x128xf32, #tpu.memory_space<vmem>>, vector<1x4x16x128xf32>
    %12 = vector.shape_cast %11 : vector<1x4x16x128xf32> to vector<4x16x128xf32>
    %13 = vector.shape_cast %10 : vector<4x16x128xf32> to vector<1x4x16x128xf32>
    tpu.vector_store %arg6[%c0_12, %c0_13, %c0_14, %c0_15], %13 {strides = array<i32>} : memref<1x4x16x128xf32, #tpu.memory_space<vmem>>, vector<1x4x16x128xf32>,
    %cst_16 = arith.constant dense<0.000000e+00> : vector<4x16x128xf32>
    %14 = tpu.matmul %1, %9, %cst_16 {dimension_numbers = #tpu.dot_dimension_numbers<[2], [1], [1], [2], [0, 0, 0, 1, 1, 2], [0], [0]>} : vector<4x16x32xbf16>, vector<4x32x128xbf16>, vector<4x16x128xf32> -> vector<4x16x128xf32>
    %c0_17 = arith.constant 0 : index
    %c0_18 = arith.constant 0 : index
    %c0_19 = arith.constant 0 : index
    %c0_20 = arith.constant 0 : index
    %15 = vector.load %arg7[%c0_17, %c0_18, %c0_19, %c0_20] : memref<1x4x16x128xf32, #tpu.memory_space<vmem>>, vector<1x4x16x128xf32>
    %16 = vector.shape_cast %15 : vector<1x4x16x128xf32> to vector<4x16x128xf32>
    %17 = vector.shape_cast %14 : vector<4x16x128xf32> to vector<1x4x16x128xf32>
    tpu.vector_store %arg7[%c0_17, %c0_18, %c0_19, %c0_20], %17 {strides = array<i32>} : memref<1x4x16x128xf32, #tpu.memory_space<vmem>>, vector<1x4x16x128xf32>,
    return
  }
  func.func @transform_0(%arg0: i32, %arg1: i32, %arg2: i32) -> (i32, i32, i32, i32) {
    %c0_i32 = arith.constant 0 : i32
    %c0_i32_0 = arith.constant 0 : i32
    %c0_i32_1 = arith.constant 0 : i32
    return %arg0, %arg1, %c0_i32, %c0_i32_0 : i32, i32, i32, i32
  }
  func.func @transform_1(%arg0: i32, %arg1: i32, %arg2: i32) -> (i32, i32, i32, i32) {
    %c0_i32 = arith.constant 0 : i32
    %c0_i32_0 = arith.constant 0 : i32
    return %arg0, %arg1, %c0_i32, %arg2 : i32, i32, i32, i32
  }
  func.func @transform_2(%arg0: i32, %arg1: i32, %arg2: i32) -> (i32, i32, i32, i32) {
    %c0_i32 = arith.constant 0 : i32
    %c0_i32_0 = arith.constant 0 : i32
    return %arg0, %arg1, %c0_i32, %arg2 : i32, i32, i32, i32
  }
  func.func @transform_3(%arg0: i32, %arg1: i32, %arg2: i32) -> (i32, i32, i32, i32) {
    %c0_i32 = arith.constant 0 : i32
    %c0_i32_0 = arith.constant 0 : i32
    return %arg0, %arg1, %c0_i32, %arg2 : i32, i32, i32, i32
  }
  func.func @transform_4(%arg0: i32, %arg1: i32, %arg2: i32) -> (i32, i32, i32, i32) {
    %c0_i32 = arith.constant 0 : i32
    %c0_i32_0 = arith.constant 0 : i32
    return %arg0, %arg1, %c0_i32, %arg2 : i32, i32, i32, i32
  }
}

</mosaic_0001>

<bundles_post_ra>
// kernel: custom-call.1
= control target key start
LH: loop header
LB: loop body
LE: loop exit
PB: predicated region body
PF: predicated region fallthrough
CT: control target
= control target key end

     0   :  { %s59_s0 = inlined_call_operand.hbm [shape: c64[4,4,4,4], index: 0, kind: input, shape index: {}]   ;;  %s60_s1 = inlined_call_operand.vmem [shape: f32[4,4,4,4], index: 1, kind: output, shape index: {}]  }
   0x1   :  { %s2_s8 = scalar_lea.hbm %s59_s0, 1024 }
   0x2   :  { %3 = vsyncpa [#allocation0], 0  ;;  %s4_s11 = sshll.u32 %s60_s1, 4  ;;  %s34_s14 = scalar_lea.hbm %s59_s0, 2048  ;;  %s5_s11 = int_to_ptr.vmem [resolvable:$true] %s4_s11 }
   0x3   :  { %p11_p0 = scmp.ne.s32.totalorder %s2_s8, %s34_s14  ;;  %p13_p1 = scmp.lt.u32.totalorder %s2_s8, %s59_s0 }
   0x4   :  { %p14_p2 = scmp.lt.u32.totalorder %s34_s14, %s34_s14  ;;  %p16_p4 = scmp.lt.u32.totalorder %s34_s14, %s2_s8 }
   0x6   :  { %p15_p3 = por %p14_p2, %p13_p1 }
   0x8   :  { %p17_p5 = por %p16_p4, %p15_p3 }
   0xa   :  { %p18_p6 = pnand %p17_p5, %p11_p0 }
   0xc   :  { %21 = shalt.err (!%p18_p6)  }
   0xd   :  { %s22_s17 = scalar_lea.vmem %s5_s11, 1024  ;;  %p27_p8 = scmp.lt.s32.totalorder %s5_s11, %s5_s11 }
   0xe   :  { %p23_p7 = scmp.ne.s32.totalorder %s5_s11, %s22_s17  ;;  %p28_p9 = scmp.lt.s32.totalorder %s22_s17, %s22_s17 }
  0x10   :  { %p29_p10 = por %p28_p9, %p27_p8 }
  0x12   :  { %p30_p11 = pnand %p29_p10, %p23_p7 }
  0x14   :  { %33 = shalt.err (!%p30_p11)  }
  0x15   :  { %7 = dma.hbm_to_vmem [thread:$0]  %s2_s8, 1024, %s5_s11, [#allocation0] }
  0x16   :  { %35 = dma.done.wait [#allocation0], 1024  }
  0x17   :  { %36 = vsyncadd [#allocation0], 4294966272 }
  0x18   :  { %9 = vsyncpa [#allocation0], 1 }

// kernel: custom-call
= control target key start
LH: loop header
LB: loop body
LE: loop exit
PB: predicated region body
PF: predicated region fallthrough
CT: control target
= control target key end

     0   :  { %2 = vsyncpa [#allocation0], 0  ;;  %s61_s0 = inlined_call_operand.hbm [shape: c64[4,4,4,4], index: 0, kind: input, shape index: {}]   ;;  %s62_s1 = inlined_call_operand.vmem [shape: f32[4,4,4,4], index: 1, kind: output, shape index: {}]  }
   0x1   :  { %s3_s8 = sshll.u32 %s62_s1, 4  ;;  %s9_s11 = scalar_lea.hbm %s61_s0, 1024  ;;  %s4_s8 = int_to_ptr.vmem [resolvable:$true] %s3_s8 }
   0x2   :  { %p10_p0 = scmp.ne.s32.totalorder %s61_s0, %s9_s11  ;;  %s11_s16 = scalar_lea.hbm %s61_s0, 2048 }
   0x3   :  { %p12_p1 = scmp.lt.u32.totalorder %s11_s16, %s9_s11  ;;  %p13_p2 = scmp.lt.u32.totalorder %s9_s11, %s61_s0 }
   0x5   :  { %p14_p3 = por %p13_p2, %p12_p1 }
   0x7   :  { %p15_p4 = pnand %p14_p3, %p10_p0 }
   0x9   :  { %18 = shalt.err (!%p15_p4)  }
   0xa   :  { %s19_s1 = scalar_lea.vmem %s4_s8, 1024  ;;  %p24_p6 = scmp.lt.s32.totalorder %s4_s8, %s4_s8 }
   0xb   :  { %p20_p5 = scmp.ne.s32.totalorder %s4_s8, %s19_s1  ;;  %p25_p7 = scmp.lt.s32.totalorder %s19_s1, %s19_s1 }
   0xd   :  { %p26_p8 = por %p25_p7, %p24_p6 }
   0xf   :  { %p27_p9 = pnand %p26_p8, %p20_p5 }
  0x11   :  { %30 = shalt.err (!%p27_p9)  }
  0x12   :  { %6 = dma.hbm_to_vmem [thread:$0]  %s61_s0, 1024, %s4_s8, [#allocation0] }
  0x13   :  { %31 = dma.done.wait [#allocation0], 1024  }
  0x14   :  { %32 = vsyncadd [#allocation0], 4294966272 }
  0x15   :  { %8 = vsyncpa [#allocation0], 1 }

// kernel: reverse.1
= control target key start
LH: loop header
LB: loop body
LE: loop exit
PB: predicated region body
PF: predicated region fallthrough
CT: control target
= control target key end

     0   :  { %v71_v3 = vlaneseq  ;;  %v64_v9 = vld [vmem:[#allocation0 + $0x7] ss:$-1 sm:$0xff]  ;;  %v78_v12 = vld [vmem:[#allocation0 + $0x17] ss:$-1 sm:$0xff]  ;;  %s329_s0 = inlined_call_operand.vmem [shape: f32[2,4,16,7], index: 0, kind: input, shape index: {}]   ;;  %s330_s1 = inlined_call_operand.vmem [shape: f32[2,4,16,7], index: 1, kind: output, shape index: {}]  }
   0x1   :  { %v44_v0 = vld [vmem:[%s329_s0] sm:$0xff]  ;;  %v46_v1 = vld [vmem:[%s329_s0 + $0x8] sm:$0xff]  ;;  %v48_v2 = vld [vmem:[%s329_s0 + $0x10] sm:$0xff]  ;;  %v65_v10 = vrot.slane %v64_v9, 1  ;;  %v79_v14 = vrot.slane %v78_v12, 1 }
   0x2   :  { %45 = vst [vmem:[#allocation0 + $0x8] sm:$0xff] %v44_v0  ;;  %47 = vst [vmem:[#allocation0 + $0x18] sm:$0xff] %v46_v1  ;;  %v50_v4 = vld [vmem:[%s329_s0 + $0x18] sm:$0xff]  ;;  %v52_v5 = vld [vmem:[%s329_s0 + $0x20] sm:$0xff]  ;;  %v72_v11 = vshrl.u32 %v71_v3, 7 }
   0x3   :  { %49 = vst [vmem:[#allocation0 + $0x28] sm:$0xff] %v48_v2  ;;  %v54_v6 = vld [vmem:[%s329_s0 + $0x28] sm:$0xff]  ;;  %51 = vst [vmem:[#allocation0 + $0x38] sm:$0xff] %v50_v4  ;;  %v56_v7 = vld [vmem:[%s329_s0 + $0x30] sm:$0xff] }
   0x4   :  { %53 = vst [vmem:[#allocation0 + $0x48] sm:$0xff] %v52_v5  ;;  %55 = vst [vmem:[#allocation0 + $0x58] sm:$0xff] %v54_v6  ;;  %v58_v8 = vld [vmem:[%s329_s0 + $0x38] sm:$0xff]  ;;  %v92_v13 = vld [vmem:[#allocation0 + $0x27] ss:$-1 sm:$0xff]  ;;  %vm73_vm0 = vcmp.lt.s32.totalorder %v72_v11, 7 }
   0x5   :  { %57 = vst [vmem:[#allocation0 + $0x68] sm:$0xff] %v56_v7  ;;  %59 = vst [vmem:[#allocation0 + $0x78] sm:$0xff] %v58_v8  ;;  %v93_v15 = vrot.slane %v92_v13, 1  ;;  %v106_v16 = vld [vmem:[#allocation0 + $0x37] ss:$-1 sm:$0xff] }
   0x6   :  { %66 = vst [vmem:[#allocation1] sm:$0xff] %v65_v10  ;;  %v107_v17 = vrot.slane %v106_v16, 1  ;;  %v120_v18 = vld [vmem:[#allocation0 + $0x47] ss:$-1 sm:$0xff]  ;;  %v134_v19 = vld [vmem:[#allocation0 + $0x57] ss:$-1 sm:$0xff] }
   0x7   :  { %80 = vst [vmem:[#allocation1 + $0x8] sm:$0xff] %v79_v14  ;;  %94 = vst [vmem:[#allocation1 + $0x10] sm:$0xff] %v93_v15  ;;  %v121_v20 = vrot.slane %v120_v18, 1  ;;  %v135_v21 = vrot.slane %v134_v19, 1  ;;  %v148_v22 = vld [vmem:[#allocation0 + $0x67] ss:$-1 sm:$0xff] }
   0x8   :  { %v162_v23 = vld [vmem:[#allocation0 + $0x77] ss:$-1 sm:$0xff]  ;;  %108 = vst [vmem:[#allocation1 + $0x18] sm:$0xff] %v107_v17  ;;  %v149_v24 = vrot.slane %v148_v22, 1 }
   0x9   :  { %v163_v25 = vrot.slane %v162_v23, 1  ;;  %v69_v26 = vld [vmem:[#allocation0 + $0xf] ss:$-1 sm:$0xff]  ;;  %v83_v27 = vld [vmem:[#allocation0 + $0x1f] ss:$-1 sm:$0xff]  ;;  %122 = vst [vmem:[#allocation1 + $0x20] sm:$0xff] %v121_v20 }
   0xa   :  { %v97_v28 = vld [vmem:[#allocation0 + $0x2f] ss:$-1 sm:$0xff]  ;;  %136 = vst [vmem:[#allocation1 + $0x28] sm:$0xff] %v135_v21  ;;  %v70_v29 = vrot.slane %v69_v26, 1  ;;  %v84_v30 = vrot.slane %v83_v27, 1  ;;  %150 = vst [vmem:[#allocation1 + $0x30] sm:$0xff] %v149_v24 }
   0xb   :  { %v98_v31 = vrot.slane %v97_v28, 1  ;;  %v111_v32 = vld [vmem:[#allocation0 + $0x3f] ss:$-1 sm:$0xff]  ;;  %164 = vst [vmem:[#allocation1 + $0x38] sm:$0xff] %v163_v25  ;;  %v125_v34 = vld [vmem:[#allocation0 + $0x4f] ss:$-1 sm:$0xff] }
   0xc   :  { %v112_v33 = vrot.slane %v111_v32, 1  ;;  %v139_v35 = vld [vmem:[#allocation0 + $0x5f] ss:$-1 sm:$0xff]  ;;  %74 = vst.msk [vmem:[#allocation1] sm:$0xff] %vm73_vm0, %v70_v29  ;;  %88 = vst.msk [vmem:[#allocation1 + $0x8] sm:$0xff] %vm73_vm0, %v84_v30  ;;  %v126_v36 = vrot.slane %v125_v34, 1 }
   0xd   :  { %102 = vst.msk [vmem:[#allocation1 + $0x10] sm:$0xff] %vm73_vm0, %v98_v31  ;;  %v140_v37 = vrot.slane %v139_v35, 1  ;;  %v153_v38 = vld [vmem:[#allocation0 + $0x6f] ss:$-1 sm:$0xff]  ;;  %v167_v39 = vld [vmem:[#allocation0 + $0x7f] ss:$-1 sm:$0xff] }
   0xe   :  { %116 = vst.msk [vmem:[#allocation1 + $0x18] sm:$0xff] %vm73_vm0, %v112_v33  ;;  %v154_v40 = vrot.slane %v153_v38, 1  ;;  %v168_v41 = vrot.slane %v167_v39, 1  ;;  %130 = vst.msk [vmem:[#allocation1 + $0x20] sm:$0xff] %vm73_vm0, %v126_v36 }
   0xf   :  { %144 = vst.msk [vmem:[#allocation1 + $0x28] sm:$0xff] %vm73_vm0, %v140_v37 }
  0x10   :  { %158 = vst.msk [vmem:[#allocation1 + $0x30] sm:$0xff] %vm73_vm0, %v154_v40  ;;  %172 = vst.msk [vmem:[#allocation1 + $0x38] sm:$0xff] %vm73_vm0, %v168_v41 }
  0x13   :  { %v214_v42 = vld [vmem:[#allocation1] sm:$0xff]  ;;  %v216_v43 = vld [vmem:[#allocation1 + $0x8] sm:$0xff] }
  0x14   :  { %v218_v44 = vld [vmem:[#allocation1 + $0x10] sm:$0xff]  ;;  %215 = vst [vmem:[%s330_s1] sm:$0xff] %v214_v42  ;;  %217 = vst [vmem:[%s330_s1 + $0x8] sm:$0xff] %v216_v43 }
  0x15   :  { %219 = vst [vmem:[%s330_s1 + $0x10] sm:$0xff] %v218_v44  ;;  %v220_v45 = vld [vmem:[#allocation1 + $0x18] sm:$0xff]  ;;  %v222_v46 = vld [vmem:[#allocation1 + $0x20] sm:$0xff] }
  0x16   :  { %221 = vst [vmem:[%s330_s1 + $0x18] sm:$0xff] %v220_v45  ;;  %v224_v47 = vld [vmem:[#allocation1 + $0x28] sm:$0xff]  ;;  %223 = vst [vmem:[%s330_s1 + $0x20] sm:$0xff] %v222_v46 }
  0x17   :  { %225 = vst [vmem:[%s330_s1 + $0x28] sm:$0xff] %v224_v47  ;;  %v226_v48 = vld [vmem:[#allocation1 + $0x30] sm:$0xff]  ;;  %v228_v49 = vld [vmem:[#allocation1 + $0x38] sm:$0xff] }
  0x18   :  { %227 = vst [vmem:[%s330_s1 + $0x30] sm:$0xff] %v226_v48  ;;  %229 = vst [vmem:[%s330_s1 + $0x38] sm:$0xff] %v228_v49 }

// kernel: spectral_conv2d.1
= control target key start
LH: loop header
LB: loop body
LE: loop exit
PB: predicated region body
PF: predicated region fallthrough
CT: control target
= control target key end

     0   :  { %s1359_s15 = smov 0   ;;  %s1361_s16 = smov 0   ;;  %s1479_s0 = inlined_call_operand.vmem [shape: bf16[2,16,16,32], index: 0, kind: input, shape index: {}]   ;;  %s1480_s1 = inlined_call_operand.vmem [shape: bf16[2,16,16,128], index: 1, kind: input, shape index: {}]   ;;  %s1481_s2 = inlined_call_operand.vmem [shape: bf16[2,16,16,128], index: 2, kind: input, shape index: {}]   ;;  %s1482_s3 = inlined_call_operand.vmem [shape: f32[2,16,16,128], index: 3, kind: output, shape index: {0}]   ;;  %s1483_s4 = inlined_call_operand.vmem [shape: f32[2,16,16,128], index: 4, kind: output, shape index: {1}]  }
   0x1   :  { %s1363_s17 = smov 0   ;;  %s1365_s18 = smov 0  }
   0x2   :  { %s1367_s19 = smov 0  }
   0x3 LB: > { %s30_s20 = sadd.s32 1, %s1322_s17  ;;  %s34_s21 = sadd.s32 1, %s1326_s18  ;;  %s1330_s19 = sphi %s1367_s19, %s15_s19   ;;  %s1326_s18 = sphi %s1365_s18, %s1487_s18   ;;  %s1322_s17 = sphi %s1363_s17, %s1486_s17   ;;  %s1318_s16 = sphi %s1361_s16, %s1485_s16   ;;  %s1314_s15 = sphi %s1359_s15, %s1484_s15  }
   0x4   : > { %p32_p0 = scmp.ge.s32.totalorder %s30_s20, 4  ;;  %p1103_p1 = scmp.ge.s32.totalorder %s1330_s19, 1 }
   0x5   : > { %p246_p2 = scmp.lt.s32.totalorder %s1330_s19, 9 }
   0x6   : > { %s1489_s20 = smov (%p32_p0, %s30_s20), 0  ;;  %s1491_s21 = smov (!%p32_p0, %s34_s21), %s1326_s18 }
   0x7   : > { %p247_p3 = pnand %p1103_p1, %p246_p2  ;;  %p36_p4 = scmp.ge.s32.totalorder %s1491_s21, 2 }
   0x8   : > { %s1104_s22 = sshll.u32 (!%p247_p3), %s1314_s15, 2  ;;  %p325_p5 = scmp.lt.s32.totalorder (!%p247_p3), %s1318_s16, 1  ;;  %v1332_v0 = vmov (!%p247_p3), 0.0   ;;  %vm1333_vm0 = vmmov (!%p247_p3), 0   ;;  %vm501_vm1 = vcmask (!%p247_p3), 261120  }
   0x9   : > { %s1493_s21 = smov (%p36_p4, %s1491_s21), 0  ;;  %250 = sbr.rel (%p247_p3) target bundleno = 270 (0x10e), region = 32 }
   0xa   : > { %1174 = vmatprep.subr.bf16.mxu0 (!%p247_p3), %v1332_v0  ;;  %1182 = vmatprep.subr.bf16.mxu1 (!%p247_p3), %v1332_v0  ;;  %p327_p6 = scmp.lt.s32.totalorder (!%p247_p3), %s1104_s22, 15 }
   0xb   : > { %1178 = vmatprep.mubr.msk.bf16.mxu0 (!%p247_p3), %vm1333_vm0, %v1332_v0  ;;  %1186 = vmatprep.mubr.msk.bf16.mxu1 (!%p247_p3), %vm1333_vm0, %v1332_v0 }
  0x10   : > { %s1495_s16 = smov (!%p325_p5, %s1318_s16), 1  ;;  %s1497_s22 = smov (!%p327_p6, %s1104_s22), 15 }
  0x11   : > { %s1106_s23 = sshll.u32 %s1495_s16, 5  ;;  %s1105_s24 = sshll.u32 %s1497_s22, 1 }
  0x12   : > { %s1395_s25 = sadd.s32 %s1106_s23, %s1105_s24 }
  0x13   : > { %s1107_s26 = sshll.u32 %s1395_s25, 2  ;;  %s1119_s10 = sshll.u32 %s1395_s25, 3 }
  0x14   : > { %s347_s29 = scalar_lea.vmem %s1480_s1, %s1107_s26  ;;  %s1404_s6 = scalar_lea.vmem %s1481_s2, %s1107_s26 }
  0x15   : > { %v1280_v1 = vld [vmem:[%s347_s29] sm:$0xff]   ;;  %s1409_s9 = scalar_lea.vmem %s1479_s0, %s1107_s26  ;;  %v1281_v2 = vld [vmem:[%s347_s29 + $0x8] sm:$0xff]   ;;  %v1284_v15 = vld [vmem:[%s347_s29 + $0x10] sm:$0xff]   ;;  %s375_s13 = scalar_lea.vmem %s1482_s3, %s1119_s10 }
  0x16   : > { %1175 = vmatpush3.bf16.msra.mxu0 %v1280_v1  ;;  %v408_v3 = vld [vmem:[%s1404_s6] sm:$0xf]  ;;  %v409_v4 = vld [vmem:[%s1404_s6 + $0x4] sm:$0xf]  ;;  %v410_v5 = vld [vmem:[%s1404_s6 + $0x8] sm:$0xf]  ;;  %1183 = vmatpush3.bf16.msra.mxu1 %v1281_v2  ;;  %s389_s16 = scalar_lea.vmem %s1483_s4, %s1119_s10 }
  0x17   : > { %1176 = vmatprep.subr.bf16.mxu0 %v1332_v0  ;;  %v416_v6 = vsub.bf16 0, %v408_v3  ;;  %v417_v7 = vsub.bf16 0, %v409_v4  ;;  %v411_v8 = vld [vmem:[%s1404_s6 + $0xc] sm:$0xf]  ;;  %v418_v9 = vsub.bf16 0, %v410_v5  ;;  %1184 = vmatprep.subr.bf16.mxu1 %v1332_v0  ;;  %v1282_v11 = vld [vmem:[%s1409_s9] sm:$0xff]   ;;  %v1132_v29 = vcombine.low %v408_v3, %v409_v4 }
  0x18   : > { %v419_v10 = vsub.bf16 0, %v411_v8  ;;  %v1283_v14 = vld [vmem:[%s1409_s9 + $0x8] sm:$0xff]   ;;  %v412_v16 = vld [vmem:[%s1404_s6 + $0x10] sm:$0xf]  ;;  %v1285_v17 = vld [vmem:[%s347_s29 + $0x18] sm:$0xff]   ;;  %v1133_v30 = vcombine.low %v410_v5, %v411_v8 }
  0x19   : > { %v1128_v12 = vcombine.low %v416_v6, %v417_v7  ;;  %v413_v18 = vld [vmem:[%s1404_s6 + $0x14] sm:$0xf]  ;;  %v420_v19 = vsub.bf16 0, %v412_v16  ;;  %v414_v20 = vld [vmem:[%s1404_s6 + $0x18] sm:$0xf] }
  0x1a   : > { %v1129_v13 = vcombine.low %v418_v9, %v419_v10  ;;  %v421_v21 = vsub.bf16 0, %v413_v18  ;;  %v415_v22 = vld [vmem:[%s1404_s6 + $0x1c] sm:$0xf]  ;;  %v422_v23 = vsub.bf16 0, %v414_v20  ;;  %v1286_v27 = vld [vmem:[%s1409_s9 + $0x10] sm:$0xff]   ;;  %v1134_v31 = vcombine.low %v412_v16, %v413_v18 }
  0x1b   : > { %1177 = vmatpush3.bf16.msra.mxu0 %v1128_v12  ;;  %v423_v24 = vsub.bf16 0, %v415_v22  ;;  %v1287_v28 = vld [vmem:[%s1409_s9 + $0x18] sm:$0xff]   ;;  %v1135_v32 = vcombine.low %v414_v20, %v415_v22 }
  0x1c   : > { %1185 = vmatpush3.bf16.msra.mxu1 %v1129_v13  ;;  %1190 = vmatprep.subr.bf16.mxu0 %v1332_v0  ;;  %v1130_v25 = vcombine.low %v420_v19, %v421_v21 }
  0x1d   : > { %1198 = vmatprep.subr.bf16.mxu1 %v1332_v0  ;;  %v1131_v26 = vcombine.low %v422_v23, %v423_v24 }
  0x1e   : > { %1179 = vmatmul.mubr.msk.bf16.vlgmr.msra.gmra.mrb[0].mxu0 %vm501_vm1, %v1282_v11 }
  0x1f   : > { %1187 = vmatmul.mubr.msk.bf16.vlgmr.msra.gmra.mrb[0].mxu1 %vm501_vm1, %v1283_v14  ;;  %1191 = vmatpush3.bf16.msra.mxu0 %v1284_v15 }
  0x20   : > { %1199 = vmatpush3.bf16.msra.mxu1 %v1285_v17  ;;  %1192 = vmatprep.subr.bf16.mxu0 %v1332_v0 }
  0x21   : > { %1200 = vmatprep.subr.bf16.mxu1 %v1332_v0  ;;  %1194 = vmatprep.mubr.msk.bf16.mxu0 %vm1333_vm0, %v1332_v0 }
  0x22   : > { %1202 = vmatprep.mubr.msk.bf16.mxu1 %vm1333_vm0, %v1332_v0 }
  0x23   : > { %1193 = vmatpush3.bf16.msra.mxu0 %v1130_v25 }
  0x24   : > { %1201 = vmatpush3.bf16.msra.mxu1 %v1131_v26  ;;  %1206 = vmatprep.subr.bf16.mxu0 %v1332_v0 }
  0x25   : > { %1214 = vmatprep.subr.bf16.mxu1 %v1332_v0 }
  0x26   : > { %1195 = vmatmul.mubr.msk.bf16.vlgmr.msra.gmra.mrb[4].mxu0 %vm501_vm1, %v1286_v27 }
  0x27   : > { %1203 = vmatmul.mubr.msk.bf16.vlgmr.msra.gmra.mrb[4].mxu1 %vm501_vm1, %v1287_v28  ;;  %1207 = vmatpush3.bf16.msra.mxu0 %v1132_v29 }
  0x28   : > { %1215 = vmatpush3.bf16.msra.mxu1 %v1133_v30  ;;  %1208 = vmatprep.subr.bf16.mxu0 %v1332_v0 }
  0x29   : > { %1216 = vmatprep.subr.bf16.mxu1 %v1332_v0  ;;  %1210 = vmatprep.mubr.msk.bf16.mxu0 %vm1333_vm0, %v1332_v0 }
  0x2a   : > { %1218 = vmatprep.mubr.msk.bf16.mxu1 %vm1333_vm0, %v1332_v0 }
  0x2b   : > { %1209 = vmatpush3.bf16.msra.mxu0 %v1280_v1 }
  0x2c   : > { %1217 = vmatpush3.bf16.msra.mxu1 %v1281_v2  ;;  %1222 = vmatprep.subr.bf16.mxu0 %v1332_v0 }
  0x2d   : > { %1230 = vmatprep.subr.bf16.mxu1 %v1332_v0 }
  0x2e   : > { %1211 = vmatmul.mubr.msk.bf16.vlgmr.msra.gmra.mrb[8].mxu0 %vm501_vm1, %v1282_v11 }
  0x2f   : > { %1219 = vmatmul.mubr.msk.bf16.vlgmr.msra.gmra.mrb[8].mxu1 %vm501_vm1, %v1283_v14  ;;  %1223 = vmatpush3.bf16.msra.mxu0 %v1134_v31 }
  0x30   : > { %1231 = vmatpush3.bf16.msra.mxu1 %v1135_v32  ;;  %1224 = vmatprep.subr.bf16.mxu0 %v1332_v0 }
  0x31   : > { %1232 = vmatprep.subr.bf16.mxu1 %v1332_v0  ;;  %1226 = vmatprep.mubr.msk.bf16.mxu0 %vm1333_vm0, %v1332_v0 }
  0x32   : > { %1234 = vmatprep.mubr.msk.bf16.mxu1 %vm1333_vm0, %v1332_v0 }
  0x33   : > { %1225 = vmatpush3.bf16.msra.mxu0 %v1284_v15 }
  0x34   : > { %1233 = vmatpush3.bf16.msra.mxu1 %v1285_v17 }
  0x36   : > { %1227 = vmatmul.mubr.msk.bf16.vlgmr.msra.gmra.mrb[12].mxu0 %vm501_vm1, %v1286_v27 }
  0x37   : > { %1235 = vmatmul.mubr.msk.bf16.vlgmr.msra.gmra.mrb[12].mxu1 %vm501_vm1, %v1287_v28 }
  0xf1   : > { %v539_v33 = vpop.f32.mrb[0].mxu0 }
  0xf2   : > { %693 = vst [vmem:[%s375_s13] sm:$0xff] %v539_v33  ;;  %v588_v34 = vpop.f32.mrb[0].mxu1  ;;  %v1180_v35 = vpop.f32.mrb[1].mxu0 }
  0xf3   : > { %695 = vst [vmem:[%s375_s13 + $0x10] sm:$0xff] %v588_v34  ;;  %v1188_v36 = vpop.f32.mrb[1].mxu1  ;;  %v542_v37 = vpop.f32.mrb[2].mxu0 }
  0xf4   : > { %694 = vst [vmem:[%s375_s13 + $0x8] sm:$0xff] %v542_v37  ;;  %v591_v38 = vpop.f32.mrb[2].mxu1  ;;  %v1181_v39 = vpop.f32.mrb[3].mxu0 }
  0xf5   : > { %696 = vst [vmem:[%s375_s13 + $0x18] sm:$0xff] %v591_v38  ;;  %v1189_v40 = vpop.f32.mrb[3].mxu1 }
  0xf9   : > { %v637_v41 = vpop.f32.mrb[4].mxu0 }
  0xfa   : > { %697 = vst [vmem:[%s375_s13 + $0x20] sm:$0xff] %v637_v41  ;;  %v686_v42 = vpop.f32.mrb[4].mxu1  ;;  %v1196_v43 = vpop.f32.mrb[5].mxu0 }
  0xfb   : > { %699 = vst [vmem:[%s375_s13 + $0x30] sm:$0xff] %v686_v42  ;;  %v1204_v44 = vpop.f32.mrb[5].mxu1  ;;  %v640_v45 = vpop.f32.mrb[6].mxu0 }
  0xfc   : > { %698 = vst [vmem:[%s375_s13 + $0x28] sm:$0xff] %v640_v45  ;;  %v689_v46 = vpop.f32.mrb[6].mxu1  ;;  %v1197_v47 = vpop.f32.mrb[7].mxu0 }
  0xfd   : > { %700 = vst [vmem:[%s375_s13 + $0x38] sm:$0xff] %v689_v46  ;;  %v1205_v48 = vpop.f32.mrb[7].mxu1 }
 0x101   : > { %v735_v49 = vpop.f32.mrb[8].mxu0 }
 0x102   : > { %865 = vst [vmem:[%s389_s16] sm:$0xff] %v735_v49  ;;  %v776_v50 = vpop.f32.mrb[8].mxu1  ;;  %v1212_v51 = vpop.f32.mrb[9].mxu0 }
 0x103   : > { %867 = vst [vmem:[%s389_s16 + $0x10] sm:$0xff] %v776_v50  ;;  %v1220_v52 = vpop.f32.mrb[9].mxu1  ;;  %v738_v53 = vpop.f32.mrb[10].mxu0 }
 0x104   : > { %866 = vst [vmem:[%s389_s16 + $0x8] sm:$0xff] %v738_v53  ;;  %v779_v54 = vpop.f32.mrb[10].mxu1  ;;  %v1213_v55 = vpop.f32.mrb[11].mxu0 }
 0x105   : > { %868 = vst [vmem:[%s389_s16 + $0x18] sm:$0xff] %v779_v54  ;;  %v1221_v56 = vpop.f32.mrb[11].mxu1 }
 0x109   : > { %v817_v57 = vpop.f32.mrb[12].mxu0 }
 0x10a   : > { %869 = vst [vmem:[%s389_s16 + $0x20] sm:$0xff] %v817_v57  ;;  %v858_v58 = vpop.f32.mrb[12].mxu1  ;;  %v1228_v59 = vpop.f32.mrb[13].mxu0 }
 0x10b   : > { %871 = vst [vmem:[%s389_s16 + $0x30] sm:$0xff] %v858_v58  ;;  %v1236_v60 = vpop.f32.mrb[13].mxu1  ;;  %v820_v61 = vpop.f32.mrb[14].mxu0 }
 0x10c   : > { %870 = vst [vmem:[%s389_s16 + $0x28] sm:$0xff] %v820_v61  ;;  %v861_v62 = vpop.f32.mrb[14].mxu1  ;;  %v1229_v63 = vpop.f32.mrb[15].mxu0 }
 0x10d   : > { %872 = vst [vmem:[%s389_s16 + $0x38] sm:$0xff] %v861_v62  ;;  %v1237_v0 = vpop.f32.mrb[15].mxu1 }
 0x10e PF: > { %s15_s19 = sadd.s32 1, %s1330_s19   ;;  %s1484_s15 = smov %s1322_s17 }
 0x10f   : > { %p12_p7 = scmp.ge.s32.totalorder %s15_s19, 10   ;;  %s1485_s16 = smov %s1326_s18 }
 0x110   : > { %s1486_s17 = smov %s1489_s20  ;;  %s1487_s18 = smov %s1493_s21 }
 0x111   :  { %14 = sbr.rel (!%p12_p7) target bundleno = 3 (0x3), region = 80 }

</bundles_post_ra>
